<compile_context>
chip_gen: v7x
topology: tpu7x:2x2x1
jax: 0.10.0
libtpu: 0.0.40
codegen_flags: <defaults>
</compile_context>

<pallas_src>
import math

import jax
import jax.numpy as jnp
from jax import lax
from jax.experimental import pallas as pl
from jax.experimental.pallas import tpu as pltpu

_LOG_2PI = math.log(2.0 * math.pi)
_HIDDEN_PAD = 128  # hidden dim 100 zero-padded to full lane width


# -----------------------------------------------------------------------------
# Fused kernel: both MLPs (2 MXU pushes), centroid variance, isotropic-MVN density
# -----------------------------------------------------------------------------
def _agent2_kernel(c_ref, x_ref, w13_ref, b13_ref, w24_ref, b24_ref, out_ref):
    c = c_ref[...]                                   # (K, D) raw centroids
    x = x_ref[...]                                   # (N, D) samples
    k_rows, d = c.shape
    n_rows = x.shape[0]
    rows = k_rows + n_rows
    n_elem = float(k_rows * d)                       # variance over unpadded elems
    hp = w13_ref.shape[1] // 2                       # 128 (padded hidden)

    # ---- fused first layer: one MXU push for both MLPs -----------------------
    s = jnp.concatenate([c, x], axis=0)              # (K+N, D)
    h = jnp.dot(s, w13_ref[...],
                preferred_element_type=jnp.float32) + b13_ref[...]   # (K+N, 2*hp)

    # Zero the cross half: centroid rows keep cols [0, hp); x rows keep [hp, 2hp).
    row_ids = lax.broadcasted_iota(jnp.int32, (rows, 2 * hp), 0)
    col_ids = lax.broadcasted_iota(jnp.int32, (rows, 2 * hp), 1)
    keep = (row_ids < k_rows) == (col_ids < hp)
    h = jnp.where(keep, h, 0.0)

    # ---- fused second layer: one MXU push, then per-half bias + ReLU ---------
    y = jnp.dot(h, w24_ref[...], preferred_element_type=jnp.float32)  # (K+N, D)
    loc = jnp.maximum(y[:k_rows, :] + b24_ref[0:1, :], 0.0)           # (K, D)
    v = jnp.maximum(y[k_rows:, :] + b24_ref[1:2, :], 0.0)             # (N, D)

    # ---- sigma^2: unbiased variance over all K*D centroid elements -----------
    total = jnp.sum(jnp.sum(c, axis=1, keepdims=True), axis=0, keepdims=True)
    mean = total * (1.0 / n_elem)                    # (1, 1)
    cen = c - mean
    ss = jnp.sum(jnp.sum(cen * cen, axis=1, keepdims=True),
                 axis=0, keepdims=True)
    var = ss * (1.0 / (n_elem - 1.0))                # (1, 1)
    inv_var = pl.reciprocal(var, approx=False)       # exact; (1,1) so cost ~0

    # Normalizer folded into one scalar factor: exp(-0.5*D*log(2*pi*sigma2)).
    scale = jnp.exp(-0.5 * d * (_LOG_2PI + jnp.log(var)))             # (1, 1)

    # ---- pairwise squared distances on the MXU (Gram form) -------------------
    # sqdist[n,k] = ||v[n]||^2 - 2 v[n].loc[k] + ||loc[k]||^2
    # (Gram-trick cancellation is ~1e-6 relative here; clamp tiny negatives.)
    cross = lax.dot_general(v, loc, (((1,), (1,)), ((), ())),
                            preferred_element_type=jnp.float32)       # (N, K)
    v2 = jnp.sum(v * v, axis=1, keepdims=True)                        # (N, 1)
    ones_row = jnp.ones((1, d), jnp.float32)
    l2 = lax.dot_general(ones_row, loc * loc, (((1,), (1,)), ((), ())),
                         preferred_element_type=jnp.float32)          # (1, K)
    sqdist = jnp.maximum(v2 + l2 - 2.0 * cross, 0.0)                  # (N, K)

    out_ref[...] = scale * jnp.exp(-0.5 * sqdist * inv_var)           # (N, K)


# -----------------------------------------------------------------------------
# One-time parameter packing (out of the per-call path)
# -----------------------------------------------------------------------------
def pack_params(params, *, hidden_pad=_HIDDEN_PAD):
    """Pad hidden 100->128 and pack both MLPs side-by-side.  Exact: padded b
    entries are 0 => padded h columns are 0, and the padded rows of the second
    weights are 0, so they contribute nothing."""
    def pad_first(w, b):
        h = w.shape[1]
        return (jnp.pad(w, ((0, 0), (0, hidden_pad - h))),
                jnp.pad(b, (0, hidden_pad - h)))

    def pad_second(w):
        h = w.shape[0]
        return jnp.pad(w, ((0, hidden_pad - h), (0, 0)))

    w1, b1 = pad_first(params["w1"], params["b1"])
    w3, b3 = pad_first(params["w3"], params["b3"])
    w2 = pad_second(params["w2"])
    w4 = pad_second(params["w4"])
    return dict(
        w13=jnp.concatenate([w1, w3], axis=1),                  # (D, 2*HP)
        b13=jnp.concatenate([b1, b3]).reshape(1, -1),           # (1, 2*HP)
        w24=jnp.concatenate([w2, w4], axis=0),                  # (2*HP, D)
        b24=jnp.stack([params["b2"], params["b4"]], axis=0),    # (2, D)
    )


# -----------------------------------------------------------------------------
# Wrapper: single fused pallas_call, 6 operands, no per-call padding
# -----------------------------------------------------------------------------
def agent2_forward(packed, centroids, x):
    n = x.shape[0]
    k = centroids.shape[0]
    vmem = pl.BlockSpec(memory_space=pltpu.MemorySpace.VMEM)
    return pl.pallas_call(
        _agent2_kernel,
        out_shape=jax.ShapeDtypeStruct((n, k), jnp.float32),
        in_specs=[vmem] * 6,
        out_specs=vmem,
    )(centroids, x, packed["w13"], packed["b13"], packed["w24"], packed["b24"])


# -----------------------------------------------------------------------------
# Params / reference / demo
# -----------------------------------------------------------------------------
def init_params(key, dims, hidden=100):
    # PyTorch nn.Linear default init: U(-1/sqrt(fan_in), 1/sqrt(fan_in)).
    # Weights stored pre-transposed as (in_features, out_features).
    def linear(k, fan_in, fan_out):
        kw, kb = jax.random.split(k)
        bound = 1.0 / math.sqrt(fan_in)
        w = jax.random.uniform(kw, (fan_in, fan_out), jnp.float32, -bound, bound)
        b = jax.random.uniform(kb, (fan_out,), jnp.float32, -bound, bound)
        return w, b

    k1, k2, k3, k4 = jax.random.split(key, 4)
    w1, b1 = linear(k1, dims, hidden)
    w2, b2 = linear(k2, hidden, dims)
    w3, b3 = linear(k3, dims, hidden)
    w4, b4 = linear(k4, hidden, dims)
    return dict(w1=w1, b1=b1, w2=w2, b2=b2, w3=w3, b3=b3, w4=w4, b4=b4)


def _reference(params, centroids, x):
    """Pure-JAX reference (unpadded params) for a numerical sanity check."""
    hp = lax.Precision.HIGHEST
    h1 = jnp.dot(centroids, params["w1"], precision=hp) + params["b1"]
    loc = jax.nn.relu(jnp.dot(h1, params["w2"], precision=hp) + params["b2"])
    h2 = jnp.dot(x, params["w3"], precision=hp) + params["b3"]
    v = jax.nn.relu(jnp.dot(h2, params["w4"], precision=hp) + params["b4"])
    var = jnp.var(centroids, ddof=1)
    d = centroids.shape[1]
    sqdist = jnp.sum((v[:, None, :] - loc[None, :, :]) ** 2, axis=-1)
    logp = -0.5 * (d * jnp.log(2.0 * jnp.pi * var) + sqdist / var)
    return jnp.exp(logp)                                          # (N, K)


if __name__ == "__main__":
    dims, K, N = 32, 4, 8

    key = jax.random.PRNGKey(0)
    kp, kc, kx = jax.random.split(key, 3)
    params = init_params(kp, dims, hidden=100)
    centroids = jax.random.normal(kc, (K, dims), jnp.float32)
    x = jax.random.normal(kx, (N, dims), jnp.float32)

    # One-time packing (outside the per-call / jitted path).
    packed = pack_params(params)

    fwd = jax.jit(agent2_forward)
    out = jax.block_until_ready(fwd(packed, centroids, x))

    assert out.shape == (N, K), out.shape
    assert bool(jnp.all(jnp.isfinite(out)))
    ref = _reference(params, centroids, x)
    # Tightened tolerance (exact reciprocal, exact log, f32 weights); remaining
    # diff is MXU vs HIGHEST-precision XLA matmul rounding amplified by exp().
    assert bool(jnp.allclose(out, ref, rtol=2e-3, atol=1e-25)), (
        float(jnp.max(jnp.abs(out - ref) / jnp.abs(ref))))
    print("KERNEL_OK")
</pallas_src>

<mosaic_0001>
module attributes {stable_mosaic.version = 11 : i64} {
  func.func @_agent2_kernel(%arg0: memref<4x32xf32, #tpu.memory_space<vmem>>, %arg1: memref<8x32xf32, #tpu.memory_space<vmem>>, %arg2: memref<32x256xf32, #tpu.memory_space<vmem>>, %arg3: memref<1x256xf32, #tpu.memory_space<vmem>>, %arg4: memref<256x32xf32, #tpu.memory_space<vmem>>, %arg5: memref<2x32xf32, #tpu.memory_space<vmem>>, %arg6: memref<8x4xf32, #tpu.memory_space<vmem>>) attributes {dimension_semantics = [], scalar_prefetch = 0 : i64, scratch_operands = 0 : i64, tpu.core_type = #tpu.core_type<tc>} {
    %c0 = arith.constant 0 : index
    %c0_0 = arith.constant 0 : index
    %0 = vector.load %arg0[%c0, %c0_0] : memref<4x32xf32, #tpu.memory_space<vmem>>, vector<4x32xf32>
    %c0_1 = arith.constant 0 : index
    %c0_2 = arith.constant 0 : index
    %1 = vector.load %arg1[%c0_1, %c0_2] : memref<8x32xf32, #tpu.memory_space<vmem>>, vector<8x32xf32>
    %2 = tpu.concatenate %0, %1 in 0 : vector<4x32xf32>, vector<8x32xf32> -> vector<12x32xf32>
    %c0_3 = arith.constant 0 : index
    %c0_4 = arith.constant 0 : index
    %3 = vector.load %arg2[%c0_3, %c0_4] : memref<32x256xf32, #tpu.memory_space<vmem>>, vector<32x256xf32>
    %cst = arith.constant dense<0.000000e+00> : vector<12x256xf32>
    %4 = tpu.matmul %2, %3, %cst {dimension_numbers = #tpu.dot_dimension_numbers<[1], [0], [0], [1], [0, 0, 1, 1], [], []>} : vector<12x32xf32>, vector<32x256xf32>, vector<12x256xf32> -> vector<12x256xf32>
    %c0_5 = arith.constant 0 : index
    %c0_6 = arith.constant 0 : index
    %5 = vector.load %arg3[%c0_5, %c0_6] : memref<1x256xf32, #tpu.memory_space<vmem>>, vector<1x256xf32>
    %6 = vector.broadcast %5 : vector<1x256xf32> to vector<12x256xf32>
    %7 = arith.addf %4, %6 : vector<12x256xf32>
    %8 = tpu.iota {dimensions = array<i32: 0>} : vector<12x256xi32>
    %9 = tpu.iota {dimensions = array<i32: 1>} : vector<12x256xi32>
    %c4_i32 = arith.constant 4 : i32
    %10 = vector.broadcast %c4_i32 : i32 to vector<12x256xi32>
    %11 = arith.cmpi slt, %8, %10 : vector<12x256xi32>
    %c128_i32 = arith.constant 128 : i32
    %12 = vector.broadcast %c128_i32 : i32 to vector<12x256xi32>
    %13 = arith.cmpi slt, %9, %12 : vector<12x256xi32>
    %14 = arith.xori %11, %13 : vector<12x256xi1>
    %cst_7 = arith.constant dense<true> : vector<12x256xi1>
    %15 = arith.xori %14, %cst_7 : vector<12x256xi1>
    %cst_8 = arith.constant 0.000000e+00 : f32
    %16 = vector.broadcast %cst_8 : f32 to vector<12x256xf32>
    %17 = arith.select %15, %7, %16 : vector<12x256xi1>, vector<12x256xf32>
    %c0_9 = arith.constant 0 : index
    %c0_10 = arith.constant 0 : index
    %18 = vector.load %arg4[%c0_9, %c0_10] : memref<256x32xf32, #tpu.memory_space<vmem>>, vector<256x32xf32>
    %cst_11 = arith.constant dense<0.000000e+00> : vector<12x32xf32>
    %19 = tpu.matmul %17, %18, %cst_11 {dimension_numbers = #tpu.dot_dimension_numbers<[1], [0], [0], [1], [0, 0, 1, 1], [], []>} : vector<12x256xf32>, vector<256x32xf32>, vector<12x32xf32> -> vector<12x32xf32>
    %20 = vector.extract_strided_slice %19 {offsets = [0, 0], sizes = [4, 32], strides = [1, 1]} : vector<12x32xf32> to vector<4x32xf32>
    %c0_12 = arith.constant 0 : index
    %c0_13 = arith.constant 0 : index
    %21 = vector.load %arg5[%c0_12, %c0_13] : memref<2x32xf32, #tpu.memory_space<vmem>>, vector<1x32xf32>
    %22 = vector.broadcast %21 : vector<1x32xf32> to vector<4x32xf32>
    %23 = arith.addf %20, %22 : vector<4x32xf32>
    %cst_14 = arith.constant 0.000000e+00 : f32
    %24 = vector.broadcast %cst_14 : f32 to vector<4x32xf32>
    %25 = arith.maximumf %23, %24 : vector<4x32xf32>
    %26 = vector.extract_strided_slice %19 {offsets = [4, 0], sizes = [8, 32], strides = [1, 1]} : vector<12x32xf32> to vector<8x32xf32>
    %c1 = arith.constant 1 : index
    %c0_15 = arith.constant 0 : index
    %27 = vector.load %arg5[%c1, %c0_15] : memref<2x32xf32, #tpu.memory_space<vmem>>, vector<1x32xf32>
    %28 = vector.broadcast %27 : vector<1x32xf32> to vector<8x32xf32>
    %29 = arith.addf %26, %28 : vector<8x32xf32>
    %cst_16 = arith.constant 0.000000e+00 : f32
    %30 = vector.broadcast %cst_16 : f32 to vector<8x32xf32>
    %31 = arith.maximumf %29, %30 : vector<8x32xf32>
    %cst_17 = arith.constant dense<0.000000e+00> : vector<4xf32>
    %32 = vector.multi_reduction <add>, %0, %cst_17 [1] : vector<4x32xf32> to vector<4xf32>
    %33 = vector.shape_cast %32 : vector<4xf32> to vector<4x1xf32>
    %cst_18 = arith.constant dense<0.000000e+00> : vector<1xf32>
    %34 = vector.multi_reduction <add>, %33, %cst_18 [0] : vector<4x1xf32> to vector<1xf32>
    %35 = vector.shape_cast %34 : vector<1xf32> to vector<1x1xf32>
    %cst_19 = arith.constant 7.812500e-03 : f32
    %36 = vector.broadcast %cst_19 : f32 to vector<1x1xf32>
    %37 = arith.mulf %35, %36 : vector<1x1xf32>
    %38 = vector.broadcast %37 : vector<1x1xf32> to vector<4x32xf32>
    %39 = arith.subf %0, %38 : vector<4x32xf32>
    %40 = arith.mulf %39, %39 : vector<4x32xf32>
    %cst_20 = arith.constant dense<0.000000e+00> : vector<4xf32>
    %41 = vector.multi_reduction <add>, %40, %cst_20 [1] : vector<4x32xf32> to vector<4xf32>
    %42 = vector.shape_cast %41 : vector<4xf32> to vector<4x1xf32>
    %cst_21 = arith.constant dense<0.000000e+00> : vector<1xf32>
    %43 = vector.multi_reduction <add>, %42, %cst_21 [0] : vector<4x1xf32> to vector<1xf32>
    %44 = vector.shape_cast %43 : vector<1xf32> to vector<1x1xf32>
    %cst_22 = arith.constant 0.00787401571 : f32
    %45 = vector.broadcast %cst_22 : f32 to vector<1x1xf32>
    %46 = arith.mulf %44, %45 : vector<1x1xf32>
    %47 = tpu.reciprocal %46 : vector<1x1xf32> -> vector<1x1xf32>
    %48 = math.log %46 : vector<1x1xf32>
    %cst_23 = arith.constant 1.83787704 : f32
    %49 = vector.broadcast %cst_23 : f32 to vector<1x1xf32>
    %50 = arith.addf %49, %48 : vector<1x1xf32>
    %cst_24 = arith.constant -1.600000e+01 : f32
    %51 = vector.broadcast %cst_24 : f32 to vector<1x1xf32>
    %52 = arith.mulf %51, %50 : vector<1x1xf32>
    %53 = math.exp %52 : vector<1x1xf32>
    %cst_25 = arith.constant dense<0.000000e+00> : vector<8x4xf32>
    %54 = tpu.matmul %31, %25, %cst_25 {dimension_numbers = #tpu.dot_dimension_numbers<[1], [1], [0], [0], [0, 0, 1, 0], [], []>} : vector<8x32xf32>, vector<4x32xf32>, vector<8x4xf32> -> vector<8x4xf32>
    %55 = arith.mulf %31, %31 : vector<8x32xf32>
    %cst_26 = arith.constant dense<0.000000e+00> : vector<8xf32>
    %56 = vector.multi_reduction <add>, %55, %cst_26 [1] : vector<8x32xf32> to vector<8xf32>
    %57 = vector.shape_cast %56 : vector<8xf32> to vector<8x1xf32>
    %cst_27 = arith.constant 1.000000e+00 : f32
    %58 = vector.broadcast %cst_27 : f32 to vector<1x32xf32>
    %59 = arith.mulf %25, %25 : vector<4x32xf32>
    %cst_28 = arith.constant dense<0.000000e+00> : vector<1x4xf32>
    %60 = tpu.matmul %58, %59, %cst_28 {dimension_numbers = #tpu.dot_dimension_numbers<[1], [1], [0], [0], [0, 0, 1, 0], [], []>} : vector<1x32xf32>, vector<4x32xf32>, vector<1x4xf32> -> vector<1x4xf32>
    %61 = vector.broadcast %57 : vector<8x1xf32> to vector<8x4xf32>
    %62 = vector.broadcast %60 : vector<1x4xf32> to vector<8x4xf32>
    %63 = arith.addf %61, %62 : vector<8x4xf32>
    %cst_29 = arith.constant 2.000000e+00 : f32
    %64 = vector.broadcast %cst_29 : f32 to vector<8x4xf32>
    %65 = arith.mulf %64, %54 : vector<8x4xf32>
    %66 = arith.subf %63, %65 : vector<8x4xf32>
    %cst_30 = arith.constant 0.000000e+00 : f32
    %67 = vector.broadcast %cst_30 : f32 to vector<8x4xf32>
    %68 = arith.maximumf %66, %67 : vector<8x4xf32>
    %cst_31 = arith.constant -5.000000e-01 : f32
    %69 = vector.broadcast %cst_31 : f32 to vector<8x4xf32>
    %70 = arith.mulf %69, %68 : vector<8x4xf32>
    %71 = vector.broadcast %47 : vector<1x1xf32> to vector<8x4xf32>
    %72 = arith.mulf %70, %71 : vector<8x4xf32>
    %73 = math.exp %72 : vector<8x4xf32>
    %74 = vector.broadcast %53 : vector<1x1xf32> to vector<8x4xf32>
    %75 = arith.mulf %74, %73 : vector<8x4xf32>
    %c0_32 = arith.constant 0 : index
    %c0_33 = arith.constant 0 : index
    %76 = vector.load %arg6[%c0_32, %c0_33] : memref<8x4xf32, #tpu.memory_space<vmem>>, vector<8x4xf32>
    tpu.vector_store %arg6[%c0_32, %c0_33], %75 {strides = array<i32>} : memref<8x4xf32, #tpu.memory_space<vmem>>, vector<8x4xf32>,
    return
  }
}

</mosaic_0001>

<bundles_post_ra>
// kernel: agent2_forward.1
= control target key start
LH: loop header
LB: loop body
LE: loop exit
PB: predicated region body
PF: predicated region fallthrough
CT: control target
= control target key end

     0   :  { %v624_v3 = vmov 0.0   ;;  %vm28_vm0 = vcmask 1043456   ;;  %vm50_vm1 = vcmask 261120   ;;  %vm278_vm2 = vcmask 257024   ;;  %s840_s2 = inlined_call_operand.vmem [shape: f32[32,256], index: 2, kind: input, shape index: {}]   ;;  %s841_s0 = inlined_call_operand.vmem [shape: f32[4,32], index: 0, kind: input, shape index: {}]   ;;  %s842_s1 = inlined_call_operand.vmem [shape: f32[8,32], index: 1, kind: input, shape index: {}]   ;;  %s843_s4 = inlined_call_operand.vmem [shape: f32[256,32], index: 4, kind: input, shape index: {}]   ;;  %s844_s3 = inlined_call_operand.vmem [shape: f32[1,256], index: 3, kind: input, shape index: {}]   ;;  %s845_s5 = inlined_call_operand.vmem [shape: f32[2,32], index: 5, kind: input, shape index: {}]   ;;  %s846_s6 = inlined_call_operand.vmem [shape: f32[8,4], index: 6, kind: output, shape index: {}]  }
   0x1   :  { %v31_v0 = vld [vmem:[%s840_s2 + $0x8] sm:$0xff]  ;;  %v33_v1 = vld [vmem:[%s840_s2 + $0x18] sm:$0xff]  ;;  %v30_v2 = vld [vmem:[%s840_s2] sm:$0xff]  ;;  %120 = vmatprep.mubr.f32.mxu0 %v624_v3  ;;  %vm625_vm4 = vmmov 1   ;;  %vm626_vm7 = vmmov 0   ;;  %vm392_vm8 = vcmask 261124  }
   0x2   :  { %v570_v4 = vpack.c.bf16 %v33_v1, %v31_v0  ;;  %v32_v5 = vld [vmem:[%s840_s2 + $0x10] sm:$0xff]  ;;  %v35_v6 = vld [vmem:[%s840_s2 + $0x28] sm:$0xff]  ;;  %v37_v7 = vld [vmem:[%s840_s2 + $0x38] sm:$0xff]  ;;  %vm500_vm9 = vcmask 31748   ;;  %vm502_vm10 = vcmask 27648  }
   0x3   :  { %v572_v8 = vpack.c.bf16 %v32_v5, %v30_v2  ;;  %v574_v9 = vpack.c.bf16 %v37_v7, %v35_v6  ;;  %v34_v10 = vld [vmem:[%s840_s2 + $0x20] sm:$0xff]  ;;  %v36_v11 = vld [vmem:[%s840_s2 + $0x30] sm:$0xff]  ;;  %v172_v15 = vld [vmem:[%s843_s4 + $0x88] sm:$0xff]  ;;  %v40_v2 = vlaneseq }
   0x4   :  { %571 = vmatprep.subr.bf16.mxu0 %v570_v4  ;;  %v691_v12 = vld [vmem:[%s841_s0] sm:$0xf]  ;;  %v576_v16 = vpack.c.bf16 %v36_v11, %v34_v10  ;;  %v156_v20 = vld [vmem:[%s843_s4 + $0x8] sm:$0xff]  ;;  %v173_v21 = vld [vmem:[%s843_s4 + $0x90] sm:$0xff] }
   0x5   :  { %v24_v13 = vld [vmem:[%s842_s1] sm:$0xff]  ;;  %573 = vmatpush1.bf16.msra.mxu0 %v572_v8  ;;  %v174_v23 = vld [vmem:[%s843_s4 + $0x98] sm:$0xff]  ;;  %v157_v24 = vld [vmem:[%s843_s4 + $0x10] sm:$0xff]  ;;  %v279_v1 = vsel %vm278_vm2, %v691_v12, 0.0  ;;  %v800_v4 = vshrl.u32 %v40_v2, 7 }
   0x6   :  { %v171_v14 = vld [vmem:[%s843_s4 + $0x80] sm:$0xff]  ;;  %v26_v17 = vrot.slane %v24_v13, 4  ;;  %575 = vmatprep.subr.bf16.mxu0 %v574_v9  ;;  %v158_v25 = vld [vmem:[%s843_s4 + $0x18] sm:$0xff]  ;;  %v582_v26 = vpack.c.bf16 %v174_v23, %v173_v21  ;;  %v176_v28 = vld [vmem:[%s843_s4 + $0xa8] sm:$0xff]  ;;  %280 = vadd.xlane.f32.xlu0 %v279_v1 }
   0x7   :  { %v578_v18 = vpack.c.bf16 %v172_v15, %v171_v14  ;;  %v155_v19 = vld [vmem:[%s843_s4] sm:$0xff]  ;;  %v584_v29 = vpack.c.bf16 %v158_v25, %v157_v24  ;;  %v160_v33 = vld [vmem:[%s843_s4 + $0x28] sm:$0xff]  ;;  %v177_v34 = vld [vmem:[%s843_s4 + $0xb0] sm:$0xff]  ;;  %v46_v5 = vsub.s32 1, %v800_v4  ;;  %v42_v7 = vsub.s32 0, %v800_v4 }
   0x8   :  { %v580_v22 = vpack.c.bf16 %v156_v20, %v155_v19  ;;  %v175_v27 = vld [vmem:[%s843_s4 + $0xa0] sm:$0xff]  ;;  %v29_v30 = vsel %vm28_vm0, %v691_v12, %v26_v17  ;;  %v178_v35 = vld [vmem:[%s843_s4 + $0xb8] sm:$0xff]  ;;  %v161_v38 = vld [vmem:[%s843_s4 + $0x30] sm:$0xff]  ;;  %vm139_vm3 = vcmp.lt.s32.totalorder %v800_v4, 4 }
   0x9   :  { %579 = vmatprep.subr.bf16.mxu1 %v578_v18  ;;  %577 = vmatpush1.bf16.msra.mxu0 %v576_v16  ;;  %v586_v31 = vpack.c.bf16 %v176_v28, %v175_v27  ;;  %v159_v32 = vld [vmem:[%s843_s4 + $0x20] sm:$0xff]  ;;  %v590_v37 = vpack.c.bf16 %v178_v35, %v177_v34  ;;  %v162_v39 = vld [vmem:[%s843_s4 + $0x38] sm:$0xff]  ;;  %v180_v41 = vld [vmem:[%s843_s4 + $0xc8] sm:$0xff] }
   0xa   :  { %581 = vmatpush3.bf16.msra.mxu1 %v580_v22  ;;  %560 = vmatprep.subr.mxu0 %v624_v3  ;;  %v588_v36 = vpack.c.bf16 %v160_v33, %v159_v32  ;;  %v179_v40 = vld [vmem:[%s843_s4 + $0xc0] sm:$0xff]  ;;  %v592_v42 = vpack.c.bf16 %v162_v39, %v161_v38  ;;  %v164_v45 = vld [vmem:[%s843_s4 + $0x48] sm:$0xff]  ;;  %v181_v46 = vld [vmem:[%s843_s4 + $0xd0] sm:$0xff] }
   0xb   :  { %583 = vmatprep.subr.bf16.mxu1 %v582_v26  ;;  %v594_v43 = vpack.c.bf16 %v180_v41, %v179_v40  ;;  %v163_v44 = vld [vmem:[%s843_s4 + $0x40] sm:$0xff]  ;;  %v182_v47 = vld [vmem:[%s843_s4 + $0xd8] sm:$0xff]  ;;  %v165_v50 = vld [vmem:[%s843_s4 + $0x50] sm:$0xff] }
   0xc   :  { %508 = vmatmul.mubr.msk.f32.vlgmr.msra.gmra.mrb[0].mxu0 %vm50_vm1, %v29_v30  ;;  %v596_v48 = vpack.c.bf16 %v164_v45, %v163_v44  ;;  %v598_v49 = vpack.c.bf16 %v182_v47, %v181_v46  ;;  %v166_v51 = vld [vmem:[%s843_s4 + $0x58] sm:$0xff]  ;;  %v183_v52 = vld [vmem:[%s843_s4 + $0xe0] sm:$0xff]  ;;  %v184_v53 = vld [vmem:[%s843_s4 + $0xe8] sm:$0xff] }
   0xd   :  { %126 = vmatprep.mubr.f32.mxu0 %v624_v3  ;;  %v600_v54 = vpack.c.bf16 %v166_v51, %v165_v50  ;;  %v602_v55 = vpack.c.bf16 %v184_v53, %v183_v52  ;;  %v167_v56 = vld [vmem:[%s843_s4 + $0x60] sm:$0xff]  ;;  %v168_v57 = vld [vmem:[%s843_s4 + $0x68] sm:$0xff]  ;;  %v185_v59 = vld [vmem:[%s843_s4 + $0xf0] sm:$0xff]  ;;  %v627_v51 = vmov 1.0  }
   0xe   :  { %585 = vmatpush3.bf16.msra.mxu1 %v584_v29  ;;  %v604_v58 = vpack.c.bf16 %v168_v57, %v167_v56  ;;  %v186_v60 = vld [vmem:[%s843_s4 + $0xf8] sm:$0xff]  ;;  %v169_v62 = vld [vmem:[%s843_s4 + $0x70] sm:$0xff]  ;;  %v38_v6 = vld [vmem:[%s844_s3] sm:$0x3] }
   0xf   :  { %587 = vmatprep.subr.bf16.mxu1 %v586_v31  ;;  %v606_v61 = vpack.c.bf16 %v186_v60, %v185_v59  ;;  %v170_v63 = vld [vmem:[%s843_s4 + $0x78] sm:$0xff]  ;;  %v47_v8 = vrot.slane %v38_v6, %v46_v5  ;;  %v43_v9 = vrot.slane %v38_v6, %v42_v7  ;;  %vm143_vm5 = vmxor %vm139_vm3, %vm625_vm4  ;;  %v512_v32 = vld [vmem:[%s845_s5] ss:$0 sm:$0xff] }
  0x10   :  { %509 = vmatmul.mubr.msk.f32.gmra.mrb[2].mxu0 %vm50_vm1, %v26_v17  ;;  %v608_v0 = vpack.c.bf16 %v170_v63, %v169_v62  ;;  %vm147_vm6 = vmxor %vm143_vm5, %vm625_vm4  ;;  %v513_v33 = vld [vmem:[%s845_s5 + $0x1] ss:$0 sm:$0xff] }
  0x11   :  { %562 = vmatprep.mubr.msk.f32.mxu0 %vm626_vm7, %v624_v3 }
  0x12   :  { %589 = vmatpush3.bf16.msra.mxu1 %v588_v36 }
  0x13   :  { %591 = vmatprep.subr.bf16.mxu1 %v590_v37 }
  0x16   :  { %593 = vmatpush3.bf16.msra.mxu1 %v592_v42 }
  0x17   :  { %595 = vmatprep.subr.bf16.mxu1 %v594_v43 }
  0x1a   :  { %597 = vmatpush3.bf16.msra.mxu1 %v596_v48 }
  0x1b   :  { %599 = vmatprep.subr.bf16.mxu1 %v598_v49 }
  0x1e   :  { %601 = vmatpush3.bf16.msra.mxu1 %v600_v54 }
  0x1f   :  { %603 = vmatprep.subr.bf16.mxu1 %v602_v55 }
  0x22   :  { %605 = vmatpush3.bf16.msra.mxu1 %v604_v58 }
  0x23   :  { %607 = vmatprep.subr.bf16.mxu1 %v606_v61 }
  0x26   :  { %609 = vmatpush3.bf16.msra.mxu1 %v608_v0 }
  0x93   :  { %v281_v18 = vpop.xlane.xlu0 %280 }
  0x94   :  { %v282_v19 = vsel %vm28_vm0, %v281_v18, 0.0 }
  0x95   :  { %v283_v20 = vrot.slane %v282_v19, 4 }
  0x97   :  { %v284_v21 = vadd.f32 %v283_v20, %v282_v19 }
  0x99   :  { %v285_v22 = vrot.slane %v284_v21, 2 }
  0x9b   :  { %v286_v23 = vadd.f32 %v285_v22, %v284_v21 }
  0x9d   :  { %v287_v24 = vrot.slane %v286_v23, 1 }
  0x9f   :  { %v288_v25 = vadd.f32 %v287_v24, %v286_v23 }
  0xa1   :  { %v289_v26 = vmul.f32 0.0078125, %v288_v25 }
  0xa3   :  { %v290_v27 = vsub.f32 %v691_v12, %v289_v26 }
  0xa5   :  { %v291_v28 = vmul.f32 %v290_v27, %v290_v27 }
  0xa7   :  { %v292_v29 = vsel %vm278_vm2, %v291_v28, 0.0 }
  0xa8   :  { %293 = vadd.xlane.f32.xlu0 %v292_v29 }
  0xdf   :  { %v122_v10 = vpop.f32.mrb[0].mxu0 }
  0xe0   :  { %v124_v11 = vpop.f32.mrb[1].mxu0  ;;  %v123_v14 = vadd.f32 %v122_v10, %v43_v9 }
  0xe1   :  { %v125_v13 = vadd.f32 %v124_v11, %v47_v8 }
  0xe3   :  { %v128_v15 = vpop.f32.mrb[2].mxu0  ;;  %510 = vmatprep.mubr.msk.f32.mxu1 %vm143_vm5, %v125_v13 }
  0xe4   :  { %v130_v16 = vpop.f32.mrb[3].mxu0  ;;  %511 = vmatmul.mubr.msk.f32.vlgmr.msra.gmra.mrb[0].mxu1 %vm147_vm6, %v123_v14 }
  0xe5   :  { %v131_v17 = vadd.f32 %v130_v16, %v47_v8 }
  0xe7   :  { %256 = vmatprep.mubr.f32.mxu1 %v131_v17 }
  0xe8   :  { %257 = vmatmul.mubr.f32.gmra.mrb[2].mxu1 %v624_v3 }
 0x135   :  { %v294_v52 = vpop.xlane.xlu0 %293 }
 0x136   :  { %v295_v53 = vsel %vm28_vm0, %v294_v52, 0.0 }
 0x137   :  { %v296_v54 = vrot.slane %v295_v53, 4 }
 0x139   :  { %v297_v55 = vadd.f32 %v296_v54, %v295_v53 }
 0x13b   :  { %v298_v56 = vrot.slane %v297_v55, 2 }
 0x13d   :  { %v299_v57 = vadd.f32 %v298_v56, %v297_v55 }
 0x13f   :  { %v300_v58 = vrot.slane %v299_v57, 1 }
 0x141   :  { %v301_v59 = vadd.f32 %v300_v58, %v299_v57 }
 0x143   :  { %v302_v60 = vmul.f32 0.007874016, %v301_v59 }
 0x145   :  { %614 = vlog2.f32 %v302_v60 }
 0x146   :  { %616 = vrcp.f32 %v302_v60 }
 0x14f   :  { %v615_v61 = vpop.eup %614 }
 0x150   :  { %v305_v1 = vmul.f32 0.6931472, %v615_v61  ;;  %v617_v21 = vpop.eup %616 }
 0x152   :  { %v306_v9 = vadd.f32 1.837877, %v305_v1 }
 0x154   :  { %v307_v16 = vmul.f32 -16.0, %v306_v9 }
 0x156   :  { %v308_v22 = vmul.f32 1.442695, %v307_v16 }
 0x158   :  { %618 = vpow2.f32 %v308_v22 }
 0x1b7   :  { %v550_v30 = vpop.f32.mrb[0].mxu1 }
 0x1b8   :  { %v551_v31 = vpop.f32.mrb[1].mxu1 }
 0x1b9   :  { %v552_v34 = vadd.f32 %v551_v31, %v550_v30 }
 0x1bb   :  { %v267_v35 = vadd.f32 %v552_v34, %v512_v32  ;;  %v274_v36 = vadd.f32 %v552_v34, %v513_v33  ;;  %v553_v37 = vpop.f32.mrb[2].mxu1 }
 0x1bc   :  { %v554_v38 = vpop.f32.mrb[3].mxu1 }
 0x1bd   :  { %v268_v12 = vmax.f32 %v267_v35, 0.0  ;;  %v276_v39 = vmax.f32 %v274_v36, 0.0  ;;  %v555_v40 = vadd.f32 %v554_v38, %v553_v37 }
 0x1bf   :  { %v275_v41 = vadd.f32 %v555_v40, %v513_v33  ;;  %561 = vmatpush3.xpose.msk.msra.mxu0 %vm50_vm1, %v268_v12  ;;  %v390_v42 = vmul.f32 %v276_v39, %v276_v39  ;;  %v312_v45 = vrot.slane %v276_v39, 4  ;;  %v399_v48 = vmul.f32 %v268_v12, %v268_v12 }
 0x1c0   :  { %565 = vmatprep.subr.mxu0 %v624_v3 }
 0x1c1   :  { %v277_v43 = vmax.f32 %v275_v41, 0.0  ;;  %v393_v44 = vsel %vm392_vm8, %v390_v42, 0.0 }
 0x1c2   :  { %394 = vadd.xlane.f32.xlu1 %v393_v44 }
 0x1c3   :  { %v313_v46 = vrot.slane %v277_v43, 4  ;;  %v391_v47 = vmul.f32 %v277_v43, %v277_v43 }
 0x1c5   :  { %v396_v49 = vsel %vm278_vm2, %v391_v47, 0.0  ;;  %v314_v50 = vsel %vm28_vm0, %v312_v45, %v313_v46 }
 0x1c6   :  { %397 = vadd.xlane.f32.xlu1 %v396_v49  ;;  %563 = vmatmul.mubr.msk.f32.vlgmr.msra.gmra.mrb[4].mxu0 %vm50_vm1, %v314_v50 }
 0x1c7   :  { %566 = vmatpush3.xpose.msk.msra.mxu0 %vm50_vm1, %v399_v48  ;;  %567 = vmatprep.mubr.msk.f32.mxu0 %vm626_vm7, %v624_v3 }
 0x1ca   :  { %568 = vmatmul.mubr.msk.f32.vlgmr.msra.gmra.mrb[6].mxu0 %vm50_vm1, %v627_v51 }
 0x24f   :  { %v395_v62 = vpop.xlane.xlu1 %394 }
 0x253   :  { %v398_v8 = vpop.xlane.xlu1 %397 }
 0x299   :  { %v386_v63 = vpop.f32.mrb[4].mxu0 }
 0x29a   :  { %v564_v0 = vpop.f32.mrb[5].mxu0  ;;  %v482_v3 = vmul.f32 2.0, %v386_v63 }
 0x29c   :  { %v484_v10 = vrot.slane %v482_v3, 4 }
 0x29d   :  { %v472_v2 = vpop.f32.mrb[6].mxu0 }
 0x29e   :  { %v479_v5 = vrot.slane %v472_v2, %v42_v7  ;;  %v569_v6 = vpop.f32.mrb[7].mxu0  ;;  %v619_v7 = vpop.eup %618 }
 0x2a0   :  { %v480_v11 = vadd.f32 %v479_v5, %v395_v62  ;;  %v481_v13 = vadd.f32 %v479_v5, %v398_v8 }
 0x2a2   :  { %v486_v14 = vsub.f32 %v480_v11, %v484_v10  ;;  %v487_v15 = vsub.f32 %v481_v13, %v484_v10 }
 0x2a4   :  { %v488_v17 = vmax.f32 %v486_v14, 0.0  ;;  %v489_v18 = vmax.f32 %v487_v15, 0.0 }
 0x2a6   :  { %v490_v19 = vmul.f32 -0.5, %v488_v17  ;;  %v491_v20 = vmul.f32 -0.5, %v489_v18 }
 0x2a8   :  { %v492_v23 = vmul.f32 %v617_v21, %v490_v19  ;;  %v493_v24 = vmul.f32 %v617_v21, %v491_v20 }
 0x2aa   :  { %v494_v25 = vmul.f32 1.442695, %v492_v23  ;;  %v496_v4 = vmul.f32 1.442695, %v493_v24 }
 0x2ac   :  { %620 = vpow2.f32 %v494_v25 }
 0x2ad   :  { %622 = vpow2.f32 %v496_v4 }
 0x2b6   :  { %v621_v26 = vpop.eup %620 }
 0x2b7   :  { %v623_v27 = vpop.eup %622  ;;  %v498_v28 = vmul.f32 %v621_v26, %v619_v7 }
 0x2b8   :  { %v499_v29 = vmul.f32 %v623_v27, %v619_v7 }
 0x2b9   :  { %501 = vst.msk [vmem:[%s846_s6 - $0x4] sm:$0xf0] %vm500_vm9, %v498_v28 }
 0x2ba   :  { %503 = vst.msk [vmem:[%s846_s6 + $0x4] sm:$0xf] %vm502_vm10, %v499_v29 }

</bundles_post_ra>
